<compile_context>
chip_gen: v6e
topology: v6e:2x2x1
jax: 0.10.0
libtpu: 0.0.40
codegen_flags: <defaults>
</compile_context>

<pallas_src>
import functools
import math

import jax
import jax.numpy as jnp
from jax.experimental import pallas as pl
from jax.experimental.pallas import tpu as pltpu


# ----------------------------------------------------------------------------
# Generation-aware VMEM budgets
# ----------------------------------------------------------------------------
def _vmem_capacity_bytes():
    try:
        return int(pltpu.get_tpu_info().vmem_capacity_bytes)
    except Exception:
        return 64 * 1024 * 1024          # v7x per-TC physical VMEM (smallest gen)


def _fused_vmem_budget_bytes():
    # Working-set budget under which the whole forward is fused into one kernel.
    return min(_vmem_capacity_bytes() // 2, 48 * 1024 * 1024)


def _fused_vmem_limit_bytes():
    # Scoped-VMEM limit for the fused call (headroom for compiler temporaries).
    return min(3 * _vmem_capacity_bytes() // 4, 96 * 1024 * 1024)


# ----------------------------------------------------------------------------
# Fused whole-forward kernel (small/medium graphs: everything lives in VMEM)
# ----------------------------------------------------------------------------
def _gcn_fused_kernel(*refs, num_layers):
    """refs = (adj, x, w1, b1, ..., wL, bL, out).  All full blocks in VMEM."""
    a_ref, x_ref = refs[0], refs[1]
    wb_refs = refs[2:2 + 2 * num_layers]
    o_ref = refs[2 + 2 * num_layers]

    a = a_ref[...].astype(jnp.float32)      # bf16 {0,1} -> f32 is exact
    h = x_ref[...].astype(jnp.float32)
    for layer in range(num_layers):
        w = wb_refs[2 * layer][...]
        b = wb_refs[2 * layer + 1][...]     # (1, F_out)
        xw = jnp.dot(h, w, preferred_element_type=jnp.float32)
        h = jnp.dot(a, xw, preferred_element_type=jnp.float32) + b
        if layer < num_layers - 1:
            h = jnp.maximum(h, 0.0)
            # TODO(synk): dropout only active in training mode; inference => identity.

    # Row-wise log_softmax over the feature axis (fused, no HBM round-trip).
    m = jnp.max(h, axis=-1, keepdims=True)
    s = h - m
    lse = jnp.log(jnp.sum(jnp.exp(s), axis=-1, keepdims=True))
    o_ref[...] = (s - lse).astype(o_ref.dtype)


def gcn_forward_fused(x, adj, params):
    n = adj.shape[0]
    f_out = int(params[-1][0].shape[1])
    num_layers = len(params)

    kernel = functools.partial(_gcn_fused_kernel, num_layers=num_layers)

    in_specs = [
        pl.BlockSpec(tuple(adj.shape), lambda: (0, 0)),
        pl.BlockSpec(tuple(x.shape), lambda: (0, 0)),
    ]
    # Adjacency in bf16 halves its VMEM footprint ({0,1} exact); compute stays f32.
    args = [adj.astype(jnp.bfloat16), x.astype(jnp.float32)]
    flops = 0
    for (w, b) in params:
        in_specs.append(pl.BlockSpec(tuple(w.shape), lambda: (0, 0)))
        in_specs.append(pl.BlockSpec((1, int(b.shape[0])), lambda: (0, 0)))
        args.append(w.astype(jnp.float32))
        args.append(b.reshape(1, -1).astype(jnp.float32))
        flops += 2 * n * int(w.shape[0]) * int(w.shape[1]) + 2 * n * n * int(w.shape[1])

    bytes_accessed = int(sum(int(a.size) * a.dtype.itemsize for a in args)
                         + n * f_out * 4)

    return pl.pallas_call(
        kernel,
        out_shape=jax.ShapeDtypeStruct((n, f_out), jnp.float32),
        in_specs=in_specs,
        out_specs=pl.BlockSpec((n, f_out), lambda: (0, 0)),
        compiler_params=pltpu.CompilerParams(
            vmem_limit_bytes=int(_fused_vmem_limit_bytes())),
        cost_estimate=pl.CostEstimate(flops=int(flops),
                                      transcendentals=int(n * f_out),
                                      bytes_accessed=bytes_accessed),
    )(*args)


# ----------------------------------------------------------------------------
# Tiled per-layer kernel (large graphs): fused lin + propagate + bias (+ act)
# ----------------------------------------------------------------------------
def _gcn_layer_kernel(a_ref, h_ref, w_ref, b_ref, o_ref, acc_ref, *,
                      propagate_first, apply_relu, apply_log_softmax):
    """One GCN layer, grid = (row_tiles, k_tiles); k is the carried reduction.

    propagate_first=True  : acc += A_tile @ H_tile          (width f_in),
                            finalize: out = acc @ W + b
    propagate_first=False : acc += A_tile @ (H_tile @ W)    (width f_out),
                            bias folded into acc init at k == 0.
    """
    k = pl.program_id(1)

    @pl.when(k == 0)
    def _():
        if propagate_first:
            acc_ref[...] = jnp.zeros_like(acc_ref)
        else:
            # Fold the bias into the accumulator init (saves a finalize add).
            acc_ref[...] = jnp.broadcast_to(
                b_ref[...].astype(jnp.float32), acc_ref.shape)

    # int8 {0,1} adjacency -> bf16 is exact; the VPU convert rides the slack of
    # a memory-bound loop and keeps the dominant dot on the bf16 MXU fast path.
    a = a_ref[...].astype(jnp.float32).astype(jnp.bfloat16)
    h = h_ref[...]                                       # bf16
    if propagate_first:
        acc_ref[...] += jnp.dot(a, h, preferred_element_type=jnp.float32)
    else:
        xw = jnp.dot(h, w_ref[...], preferred_element_type=jnp.float32)
        acc_ref[...] += jnp.dot(a, xw.astype(jnp.bfloat16),
                                preferred_element_type=jnp.float32)

    @pl.when(k == pl.num_programs(1) - 1)
    def _():
        out = acc_ref[...]
        if propagate_first:
            # Tiny once-per-row-tile matmul; kept in f32 for accuracy.
            out = jnp.dot(out, w_ref[...],
                          preferred_element_type=jnp.float32) + b_ref[...]
        if apply_relu:
            out = jnp.maximum(out, 0.0)
        if apply_log_softmax:
            m = jnp.max(out, axis=-1, keepdims=True)
            s = out - m
            out = s - jnp.log(jnp.sum(jnp.exp(s), axis=-1, keepdims=True))
        o_ref[...] = out.astype(o_ref.dtype)


def gcn_layer(adj_i8, h, w, b, *, tm, tk, propagate_first, apply_relu,
              apply_log_softmax, out_dtype):
    n = adj_i8.shape[0]
    f_in, f_out = int(w.shape[0]), int(w.shape[1])
    assert n % tm == 0 and n % tk == 0
    f_acc = f_in if propagate_first else f_out

    w_arr = w.astype(jnp.float32 if propagate_first else jnp.bfloat16)
    b2d = b.reshape(1, f_out).astype(jnp.float32)
    kernel = functools.partial(_gcn_layer_kernel,
                               propagate_first=propagate_first,
                               apply_relu=apply_relu,
                               apply_log_softmax=apply_log_softmax)

    xw_copies = 1 if propagate_first else (n // tm)
    flops = 2 * n * n * f_acc + 2 * xw_copies * n * f_in * f_out
    bytes_accessed = int(n * n * 1                                   # int8 A
                         + (n // tm) * n * f_in * 2                  # bf16 H
                         + n * f_out * jnp.dtype(out_dtype).itemsize # out
                         + (f_in * f_out + f_out) * 4)

    return pl.pallas_call(
        kernel,
        out_shape=jax.ShapeDtypeStruct((n, f_out), out_dtype),
        grid=(n // tm, n // tk),                       # reduction axis last
        in_specs=[
            pl.BlockSpec((tm, tk), lambda i, k: (i, k)),      # int8 adjacency
            pl.BlockSpec((tk, f_in), lambda i, k: (k, 0)),    # bf16 H rows
            pl.BlockSpec((f_in, f_out), lambda i, k: (0, 0)), # W (resident)
            pl.BlockSpec((1, f_out), lambda i, k: (0, 0)),    # bias
        ],
        out_specs=pl.BlockSpec((tm, f_out), lambda i, k: (i, 0)),
        scratch_shapes=[pltpu.VMEM((tm, f_acc), jnp.float32)],
        compiler_params=pltpu.CompilerParams(
            # rows parallel (megacore on v7x), k is the carried reduction
            dimension_semantics=("parallel", "arbitrary")),
        cost_estimate=pl.CostEstimate(
            flops=int(flops),
            transcendentals=int(n * f_out) if apply_log_softmax else 0,
            bytes_accessed=bytes_accessed),
    )(adj_i8, h, w_arr, b2d)


def _pick_tile(n):
    """Largest tile <= 1024 whose zero-padding waste stays under ~25% of N."""
    for t in (1024, 512, 256, 128):
        n_pad = -(-n // t) * t
        if (n_pad - n) * 4 <= n:
            return t
    return 128


def gcn_forward_tiled(x, adj, params, *, tm=None, tk=None):
    n = adj.shape[0]
    t = _pick_tile(n)
    tm = t if tm is None else tm
    tk = t if tk is None else tk

    # Zero-pad N up to a common tile multiple (zero rows/cols of A and zero
    # rows of X are inert for the valid rows; padded rows are sliced off).
    step = tm * tk // math.gcd(tm, tk)
    n_pad = -(-n // step) * step
    if n_pad != n:
        adj = jnp.pad(adj, ((0, n_pad - n), (0, n_pad - n)))
        x = jnp.pad(x, ((0, n_pad - n), (0, 0)))

    # Adjacency entries are exactly {0, 1}: int8 storage is lossless, streams
    # the dominant n^2 term at 1 byte/element, and is upcast to bf16 in-kernel.
    adj_i8 = adj.astype(jnp.int8)
    h = x.astype(jnp.bfloat16)

    num_layers = len(params)
    for li, (w, b) in enumerate(params):
        is_last = li == num_layers - 1
        f_in, f_out = int(w.shape[0]), int(w.shape[1])
        h = gcn_layer(adj_i8, h, w, b, tm=tm, tk=tk,
                      propagate_first=f_in < f_out,        # n^2 term ~ min(f_in,f_out)
                      apply_relu=not is_last,
                      apply_log_softmax=is_last,
                      out_dtype=jnp.float32 if is_last else jnp.bfloat16)
        # TODO(synk): dropout only active in training mode; inference => identity.
    return h[:n]


# ----------------------------------------------------------------------------
# Dispatch: fused single kernel when everything fits VMEM, tiled otherwise
# ----------------------------------------------------------------------------
def _fused_vmem_estimate_bytes(x, adj, params):
    n = adj.shape[0]
    total = int(adj.size) * 2 + int(x.size) * 4          # bf16 A + f32 X
    for (w, b) in params:
        total += (int(w.size) + int(b.size)) * 4
        total += 2 * n * int(w.shape[1]) * 4             # xw + h live intermediates
    total += n * int(params[-1][0].shape[1]) * 4
    return int(total)


def gcn_forward(x, adj, params, *, force_tiled=False, tm=None, tk=None):
    """params: list of (W, b). ReLU after all but last layer; final log_softmax."""
    if (not force_tiled
            and _fused_vmem_estimate_bytes(x, adj, params) <= _fused_vmem_budget_bytes()):
        return gcn_forward_fused(x, adj, params)
    return gcn_forward_tiled(x, adj, params, tm=tm, tk=tk)


# ----------------------------------------------------------------------------
# Deterministic parameter init (glorot-uniform weights, zero bias, like PyG)
# ----------------------------------------------------------------------------
def init_params(key, in_channels, hidden_channels, out_channels, num_layers):
    dims = [in_channels] + [hidden_channels] * (num_layers - 1) + [out_channels]
    params = []
    for i in range(num_layers):
        key, sub = jax.random.split(key)
        fan_in, fan_out = dims[i], dims[i + 1]
        limit = jnp.sqrt(6.0 / (fan_in + fan_out))
        w = jax.random.uniform(sub, (fan_in, fan_out), jnp.float32, -limit, limit)
        b = jnp.zeros((fan_out,), jnp.float32)
        params.append((w, b))
    return params


def _reference_forward(x, adj, params):
    hp = jax.lax.Precision.HIGHEST
    h = x
    for (w, b) in params[:-1]:
        h = jnp.maximum(
            jnp.dot(adj, jnp.dot(h, w, precision=hp), precision=hp) + b, 0.0)
    w, b = params[-1]
    h = jnp.dot(adj, jnp.dot(h, w, precision=hp), precision=hp) + b
    return jax.nn.log_softmax(h, axis=-1)


def _make_graph(key_x, key_a, n, f_in, density):
    x = jax.random.normal(key_x, (n, f_in), jnp.float32)
    a = (jax.random.uniform(key_a, (n, n), jnp.float32) < density).astype(jnp.float32)
    a = jnp.maximum(a, a.T)
    a = jnp.maximum(a, jnp.eye(n, dtype=jnp.float32))
    return x, a


if __name__ == "__main__":
    key = jax.random.PRNGKey(0)

    # Small shapes consistent with the module.
    num_nodes = 64
    in_channels, hidden_channels, out_channels = 16, 32, 8
    num_layers = 3
    dropout = 0.5  # unused at inference

    k_x, k_a, k_p = jax.random.split(key, 3)
    x, adj = _make_graph(k_x, k_a, num_nodes, in_channels, 0.1)
    params = init_params(k_p, in_channels, hidden_channels, out_channels, num_layers)

    # Fused single-kernel path (what these shapes dispatch to): f32 compute,
    # bf16 adjacency (exact) -> tight tolerance still holds.
    out = gcn_forward(x, adj, params)
    jax.block_until_ready(out)

    ref = _reference_forward(x, adj, params)
    assert out.shape == (num_nodes, out_channels)
    assert jnp.max(jnp.abs(out - ref)) < 1e-4

    # Exercise the tiled path large graphs take: int8 adjacency, bf16 operands
    # on the MXU fast path, f32 VMEM accumulator, per-layer matmul ordering.
    n_big = 256
    k_x2, k_a2 = jax.random.split(jax.random.PRNGKey(1))
    x2, adj2 = _make_graph(k_x2, k_a2, n_big, in_channels, 0.03)
    out2 = gcn_forward(x2, adj2, params, force_tiled=True, tm=128, tk=128)
    jax.block_until_ready(out2)
    ref2 = _reference_forward(x2, adj2, params)
    assert out2.shape == (n_big, out_channels)
    # bf16 intermediates on the tiled path give ~1e-3..1e-2 relative error vs
    # the f32-HIGHEST reference; compare at a bf16-appropriate tolerance.
    scale2 = 1.0 + jnp.max(jnp.abs(ref2))
    assert jnp.max(jnp.abs(out2 - ref2)) < 2e-2 * scale2
    assert bool(jnp.all(jnp.isfinite(out2)))

    print("KERNEL_OK")
</pallas_src>

<mosaic_0001>
module attributes {stable_mosaic.version = 11 : i64} {
  func.func @_gcn_fused_kernel(%arg0: memref<64x64xbf16, #tpu.memory_space<vmem>>, %arg1: memref<64x16xf32, #tpu.memory_space<vmem>>, %arg2: memref<16x32xf32, #tpu.memory_space<vmem>>, %arg3: memref<1x32xf32, #tpu.memory_space<vmem>>, %arg4: memref<32x32xf32, #tpu.memory_space<vmem>>, %arg5: memref<1x32xf32, #tpu.memory_space<vmem>>, %arg6: memref<32x8xf32, #tpu.memory_space<vmem>>, %arg7: memref<1x8xf32, #tpu.memory_space<vmem>>, %arg8: memref<64x8xf32, #tpu.memory_space<vmem>>) attributes {dimension_semantics = [], scalar_prefetch = 0 : i64, scratch_operands = 0 : i64, tpu.core_type = #tpu.core_type<tc>} {
    %c0 = arith.constant 0 : index
    %c0_0 = arith.constant 0 : index
    %0 = vector.load %arg0[%c0, %c0_0] : memref<64x64xbf16, #tpu.memory_space<vmem>>, vector<64x64xbf16>
    %1 = arith.extf %0 : vector<64x64xbf16> to vector<64x64xf32>
    %c0_1 = arith.constant 0 : index
    %c0_2 = arith.constant 0 : index
    %2 = vector.load %arg1[%c0_1, %c0_2] : memref<64x16xf32, #tpu.memory_space<vmem>>, vector<64x16xf32>
    %c0_3 = arith.constant 0 : index
    %c0_4 = arith.constant 0 : index
    %3 = vector.load %arg2[%c0_3, %c0_4] : memref<16x32xf32, #tpu.memory_space<vmem>>, vector<16x32xf32>
    %c0_5 = arith.constant 0 : index
    %c0_6 = arith.constant 0 : index
    %4 = vector.load %arg3[%c0_5, %c0_6] : memref<1x32xf32, #tpu.memory_space<vmem>>, vector<1x32xf32>
    %cst = arith.constant dense<0.000000e+00> : vector<64x32xf32>
    %5 = tpu.matmul %2, %3, %cst {dimension_numbers = #tpu.dot_dimension_numbers<[1], [0], [0], [1], [0, 0, 1, 1], [], []>} : vector<64x16xf32>, vector<16x32xf32>, vector<64x32xf32> -> vector<64x32xf32>
    %cst_7 = arith.constant dense<0.000000e+00> : vector<64x32xf32>
    %6 = tpu.matmul %1, %5, %cst_7 {dimension_numbers = #tpu.dot_dimension_numbers<[1], [0], [0], [1], [0, 0, 1, 1], [], []>} : vector<64x64xf32>, vector<64x32xf32>, vector<64x32xf32> -> vector<64x32xf32>
    %7 = vector.broadcast %4 : vector<1x32xf32> to vector<64x32xf32>
    %8 = arith.addf %6, %7 : vector<64x32xf32>
    %cst_8 = arith.constant 0.000000e+00 : f32
    %9 = vector.broadcast %cst_8 : f32 to vector<64x32xf32>
    %10 = arith.maximumf %8, %9 : vector<64x32xf32>
    %c0_9 = arith.constant 0 : index
    %c0_10 = arith.constant 0 : index
    %11 = vector.load %arg4[%c0_9, %c0_10] : memref<32x32xf32, #tpu.memory_space<vmem>>, vector<32x32xf32>
    %c0_11 = arith.constant 0 : index
    %c0_12 = arith.constant 0 : index
    %12 = vector.load %arg5[%c0_11, %c0_12] : memref<1x32xf32, #tpu.memory_space<vmem>>, vector<1x32xf32>
    %cst_13 = arith.constant dense<0.000000e+00> : vector<64x32xf32>
    %13 = tpu.matmul %10, %11, %cst_13 {dimension_numbers = #tpu.dot_dimension_numbers<[1], [0], [0], [1], [0, 0, 1, 1], [], []>} : vector<64x32xf32>, vector<32x32xf32>, vector<64x32xf32> -> vector<64x32xf32>
    %cst_14 = arith.constant dense<0.000000e+00> : vector<64x32xf32>
    %14 = tpu.matmul %1, %13, %cst_14 {dimension_numbers = #tpu.dot_dimension_numbers<[1], [0], [0], [1], [0, 0, 1, 1], [], []>} : vector<64x64xf32>, vector<64x32xf32>, vector<64x32xf32> -> vector<64x32xf32>
    %15 = vector.broadcast %12 : vector<1x32xf32> to vector<64x32xf32>
    %16 = arith.addf %14, %15 : vector<64x32xf32>
    %cst_15 = arith.constant 0.000000e+00 : f32
    %17 = vector.broadcast %cst_15 : f32 to vector<64x32xf32>
    %18 = arith.maximumf %16, %17 : vector<64x32xf32>
    %c0_16 = arith.constant 0 : index
    %c0_17 = arith.constant 0 : index
    %19 = vector.load %arg6[%c0_16, %c0_17] : memref<32x8xf32, #tpu.memory_space<vmem>>, vector<32x8xf32>
    %c0_18 = arith.constant 0 : index
    %c0_19 = arith.constant 0 : index
    %20 = vector.load %arg7[%c0_18, %c0_19] : memref<1x8xf32, #tpu.memory_space<vmem>>, vector<1x8xf32>
    %cst_20 = arith.constant dense<0.000000e+00> : vector<64x8xf32>
    %21 = tpu.matmul %18, %19, %cst_20 {dimension_numbers = #tpu.dot_dimension_numbers<[1], [0], [0], [1], [0, 0, 1, 1], [], []>} : vector<64x32xf32>, vector<32x8xf32>, vector<64x8xf32> -> vector<64x8xf32>
    %cst_21 = arith.constant dense<0.000000e+00> : vector<64x8xf32>
    %22 = tpu.matmul %1, %21, %cst_21 {dimension_numbers = #tpu.dot_dimension_numbers<[1], [0], [0], [1], [0, 0, 1, 1], [], []>} : vector<64x64xf32>, vector<64x8xf32>, vector<64x8xf32> -> vector<64x8xf32>
    %23 = vector.broadcast %20 : vector<1x8xf32> to vector<64x8xf32>
    %24 = arith.addf %22, %23 : vector<64x8xf32>
    %cst_22 = arith.constant dense<0xFF800000> : vector<64xf32>
    %25 = vector.multi_reduction <maximumf>, %24, %cst_22 [1] : vector<64x8xf32> to vector<64xf32>
    %26 = vector.shape_cast %25 : vector<64xf32> to vector<64x1xf32>
    %27 = vector.broadcast %26 : vector<64x1xf32> to vector<64x8xf32>
    %28 = arith.subf %24, %27 : vector<64x8xf32>
    %29 = math.exp %28 : vector<64x8xf32>
    %cst_23 = arith.constant dense<0.000000e+00> : vector<64xf32>
    %30 = vector.multi_reduction <add>, %29, %cst_23 [1] : vector<64x8xf32> to vector<64xf32>
    %31 = vector.shape_cast %30 : vector<64xf32> to vector<64x1xf32>
    %32 = math.log %31 : vector<64x1xf32>
    %33 = vector.broadcast %32 : vector<64x1xf32> to vector<64x8xf32>
    %34 = arith.subf %28, %33 : vector<64x8xf32>
    %c0_24 = arith.constant 0 : index
    %c0_25 = arith.constant 0 : index
    %35 = vector.load %arg8[%c0_24, %c0_25] : memref<64x8xf32, #tpu.memory_space<vmem>>, vector<64x8xf32>
    tpu.vector_store %arg8[%c0_24, %c0_25], %34 {strides = array<i32>} : memref<64x8xf32, #tpu.memory_space<vmem>>, vector<64x8xf32>,
    return
  }
}

</mosaic_0001>

<bundles_post_ra>
// kernel: tpu_custom_call.1
= control target key start
LH: loop header
LB: loop body
LE: loop exit
PB: predicated region body
PF: predicated region fallthrough
CT: control target
= control target key end

     0   :  { %vm56_vm0 = vcmask 130048   ;;  %vm192_vm1 = vcmask 523264   ;;  %vm335_vm2 = vcmask 261120   ;;  %vm829_vm3 = vcmask 64512   ;;  %s1566_s2 = inlined_call_operand.vmem [shape: f32[16,32], index: 2, kind: input, shape index: {}]   ;;  %s1567_s1 = inlined_call_operand.vmem [shape: f32[64,16], index: 1, kind: input, shape index: {}]   ;;  %s1568_s0 = inlined_call_operand.vmem [shape: bf16[64,64], index: 0, kind: input, shape index: {}]   ;;  %s1569_s4 = inlined_call_operand.vmem [shape: f32[32,32], index: 4, kind: input, shape index: {}]   ;;  %s1570_s3 = inlined_call_operand.vmem [shape: f32[1,32], index: 3, kind: input, shape index: {}]   ;;  %s1571_s6 = inlined_call_operand.vmem [shape: f32[32,8], index: 6, kind: input, shape index: {}]   ;;  %s1572_s5 = inlined_call_operand.vmem [shape: f32[1,32], index: 5, kind: input, shape index: {}]   ;;  %s1573_s7 = inlined_call_operand.vmem [shape: f32[1,8], index: 7, kind: input, shape index: {}]   ;;  %s1574_s8 = inlined_call_operand.vmem [shape: f32[64,8], index: 8, kind: output, shape index: {}]  }
   0x1   :  { %v54_v0 = vld [vmem:[%s1566_s2 + $0x8] sm:$0xff]  ;;  %v53_v1 = vld [vmem:[%s1566_s2] sm:$0xff]  ;;  %v47_v4 = vld [vmem:[%s1567_s1 + $0x10] sm:$0xff] }
   0x2   :  { %v45_v2 = vld [vmem:[%s1567_s1] sm:$0xff]  ;;  %1090 = vmatprep.subr.mxu0 %v54_v0  ;;  %v46_v3 = vld [vmem:[%s1567_s1 + $0x8] sm:$0xff]  ;;  %v48_v5 = vld [vmem:[%s1567_s1 + $0x18] sm:$0xff] }
   0x3   :  { %1094 = vmatprep.mubr.msk.f32.mxu0 %vm56_vm0, %v45_v2  ;;  %1091 = vmatpush3.msra.mxu0 %v54_v0  ;;  %v49_v6 = vld [vmem:[%s1567_s1 + $0x20] sm:$0xff]  ;;  %v50_v7 = vld [vmem:[%s1567_s1 + $0x28] sm:$0xff]  ;;  %v51_v8 = vld [vmem:[%s1567_s1 + $0x30] sm:$0xff] }
   0x4   :  { %1092 = vmatprep.subr.mxu0 %v53_v1  ;;  %v52_v9 = vld [vmem:[%s1567_s1 + $0x38] sm:$0xff]  ;;  %v990_v10 = vld [vmem:[%s1568_s0] sm:$0xff]   ;;  %v332_v13 = vld [vmem:[%s1569_s4 + $0x10] sm:$0xff] }
   0x5   :  { %1093 = vmatpush3.msra.mxu0 %v53_v1  ;;  %v1364_v11 = vunpack.c.l.bf16 %v990_v10  ;;  %v333_v12 = vld [vmem:[%s1569_s4 + $0x18] sm:$0xff]  ;;  %v1005_v22 = vld [vmem:[%s1568_s0 + $0x8] sm:$0xff]   ;;  %v1377_v23 = vunpack.c.h.bf16 %v990_v10  ;;  %v1006_v25 = vld [vmem:[%s1568_s0 + $0x10] sm:$0xff]  }
   0x6   :  { %1095 = vmatmul.mubr.msk.f32.vlgmr.msra.gmra.mxu0 %vm56_vm0, %v46_v3  ;;  %1134 = vmatprep.subr.mxu0 %v333_v12  ;;  %v1379_v24 = vunpack.c.l.bf16 %v1005_v22  ;;  %v1386_v26 = vunpack.c.h.bf16 %v1005_v22  ;;  %v1390_v27 = vunpack.c.l.bf16 %v1006_v25  ;;  %v1007_v28 = vld [vmem:[%s1568_s0 + $0x18] sm:$0xff]   ;;  %v1397_v29 = vunpack.c.h.bf16 %v1006_v25  ;;  %v331_v32 = vld [vmem:[%s1569_s4 + $0x8] sm:$0xff]  ;;  %v330_v33 = vld [vmem:[%s1569_s4] sm:$0xff] }
   0x7   :  { %1097 = vmatprep.mubr.msk.f32.mxu0 %vm56_vm0, %v47_v4  ;;  %1122 = vmatprep.mubr.msk.f32.mxu1 %vm192_vm1, %v1364_v11  ;;  %v1401_v30 = vunpack.c.l.bf16 %v1007_v28  ;;  %v1405_v31 = vunpack.c.h.bf16 %v1007_v28  ;;  %v946_v34 = vld [vmem:[%s1570_s3] ss:$0 sm:$0xff]  ;;  %v587_v59 = vld [vmem:[%s1571_s6 + $0x18] sm:$0xff]  ;;  %v586_v60 = vld [vmem:[%s1571_s6 + $0x10] sm:$0xff] }
   0x8   :  { %1135 = vmatpush3.msra.mxu0 %v333_v12 }
   0x9   :  { %1136 = vmatprep.subr.mxu0 %v332_v13 }
   0xa   :  { %1098 = vmatmul.mubr.msk.f32.gmra.mxu0 %vm56_vm0, %v48_v5  ;;  %v585_v5 = vld [vmem:[%s1571_s6 + $0x8] sm:$0xff] }
   0xb   :  { %1100 = vmatprep.mubr.msk.f32.mxu0 %vm56_vm0, %v49_v6  ;;  %1137 = vmatpush3.msra.mxu0 %v332_v13  ;;  %v584_v6 = vld [vmem:[%s1571_s6] sm:$0xff] }
   0xc   :  { %1138 = vmatprep.subr.mxu0 %v331_v32 }
   0xd   :  { %1139 = vmatpush3.msra.mxu0 %v331_v32 }
   0xe   :  { %1101 = vmatmul.mubr.msk.f32.gmra.mxu0 %vm56_vm0, %v50_v7  ;;  %1140 = vmatprep.subr.mxu0 %v330_v33  ;;  %v963_v7 = vld [vmem:[%s1572_s5] ss:$0 sm:$0xff] }
   0xf   :  { %1103 = vmatprep.mubr.msk.f32.mxu0 %vm56_vm0, %v51_v8  ;;  %1141 = vmatpush3.msra.mxu0 %v330_v33 }
  0x10   :  { %1182 = vmatprep.subr.mxu0 %v587_v59 }
  0x12   :  { %1104 = vmatmul.mubr.msk.f32.gmra.mxu0 %vm56_vm0, %v52_v9 }
  0xc6   :  { %v1096_v14 = vpop.f32.mrf.mxu0 }
  0xc8   :  { %v147_v15 = vpop.f32.mrf.mxu0 }
  0xca   :  { %v1099_v16 = vpop.f32.mrf.mxu0 }
  0xcc   :  { %v157_v17 = vpop.f32.mrf.mxu0 }
  0xce   :  { %v1102_v18 = vpop.f32.mrf.mxu0 }
  0xd0   :  { %v167_v19 = vpop.f32.mrf.mxu0 }
  0xd2   :  { %v1105_v20 = vpop.f32.mrf.mxu0 }
  0xd3   :  { %1106 = vmatprep.subr.mxu1 %v1105_v20 }
  0xd4   :  { %v177_v21 = vpop.f32.mrf.mxu0  ;;  %1107 = vmatpush3.msra.mxu1 %v1105_v20 }
  0xd5   :  { %1108 = vmatprep.subr.mxu1 %v177_v21 }
  0xd6   :  { %1109 = vmatpush3.msra.mxu1 %v177_v21 }
  0xd7   :  { %1110 = vmatprep.subr.mxu1 %v1102_v18 }
  0xd8   :  { %1111 = vmatpush3.msra.mxu1 %v1102_v18 }
  0xd9   :  { %1112 = vmatprep.subr.mxu1 %v167_v19 }
  0xda   :  { %1113 = vmatpush3.msra.mxu1 %v167_v19 }
  0xdb   :  { %1114 = vmatprep.subr.mxu1 %v1099_v16 }
  0xdc   :  { %1115 = vmatpush3.msra.mxu1 %v1099_v16 }
  0xdd   :  { %1116 = vmatprep.subr.mxu1 %v157_v17 }
  0xde   :  { %1117 = vmatpush3.msra.mxu1 %v157_v17 }
  0xdf   :  { %1118 = vmatprep.subr.mxu1 %v1096_v14 }
  0xe0   :  { %1119 = vmatpush3.msra.mxu1 %v1096_v14 }
  0xe1   :  { %1120 = vmatprep.subr.mxu1 %v147_v15 }
  0xe2   :  { %1121 = vmatpush3.msra.mxu1 %v147_v15 }
  0xe3   :  { %1123 = vmatmul.mubr.msk.f32.vlgmr.msra.gmra.mxu1 %vm192_vm1, %v1377_v23 }
  0xe4   :  { %1125 = vmatprep.mubr.msk.f32.mxu1 %vm192_vm1, %v1379_v24 }
  0xe7   :  { %1126 = vmatmul.mubr.msk.f32.gmra.mxu1 %vm192_vm1, %v1386_v26 }
  0xe8   :  { %1128 = vmatprep.mubr.msk.f32.mxu1 %vm192_vm1, %v1390_v27 }
  0xeb   :  { %1129 = vmatmul.mubr.msk.f32.gmra.mxu1 %vm192_vm1, %v1397_v29 }
  0xec   :  { %1131 = vmatprep.mubr.msk.f32.mxu1 %vm192_vm1, %v1401_v30 }
  0xef   :  { %1132 = vmatmul.mubr.msk.f32.gmra.mxu1 %vm192_vm1, %v1405_v31 }
  0xf0   :  { %1170 = vmatprep.mubr.msk.f32.mxu1 %vm192_vm1, %v1364_v11 }
 0x1a3   :  { %v1124_v35 = vpop.f32.mrf.mxu1 }
 0x1a4   :  { %v289_v36 = vadd.f32 %v1124_v35, %v946_v34 }
 0x1a5   :  { %v283_v37 = vpop.f32.mrf.mxu1 }
 0x1a6   :  { %v284_v38 = vadd.f32 %v946_v34, %v283_v37  ;;  %v323_v41 = vmax.f32 %v289_v36, 0.0 }
 0x1a7   :  { %v1127_v39 = vpop.f32.mrf.mxu1 }
 0x1a8   :  { %v322_v40 = vmax.f32 %v284_v38, 0.0  ;;  %v299_v42 = vadd.f32 %v1127_v39, %v946_v34 }
 0x1a9   :  { %v293_v43 = vpop.f32.mrf.mxu1 }
 0x1aa   :  { %v294_v44 = vadd.f32 %v946_v34, %v293_v43  ;;  %1142 = vmatprep.mubr.msk.f32.mxu0 %vm335_vm2, %v322_v40  ;;  %v325_v47 = vmax.f32 %v299_v42, 0.0 }
 0x1ab   :  { %v1130_v45 = vpop.f32.mrf.mxu1  ;;  %1143 = vmatmul.mubr.msk.f32.vlgmr.msra.gmra.mxu0 %vm335_vm2, %v323_v41 }
 0x1ac   :  { %v324_v46 = vmax.f32 %v294_v44, 0.0  ;;  %v309_v48 = vadd.f32 %v1130_v45, %v946_v34  ;;  %1183 = vmatpush3.msra.mxu0 %v587_v59 }
 0x1ad   :  { %v303_v49 = vpop.f32.mrf.mxu1  ;;  %1184 = vmatprep.subr.mxu0 %v586_v60 }
 0x1ae   :  { %v304_v50 = vadd.f32 %v946_v34, %v303_v49  ;;  %1145 = vmatprep.mubr.msk.f32.mxu0 %vm335_vm2, %v324_v46  ;;  %v327_v53 = vmax.f32 %v309_v48, 0.0  ;;  %1185 = vmatpush3.msra.mxu0 %v586_v60 }
 0x1af   :  { %v1133_v51 = vpop.f32.mrf.mxu1  ;;  %1146 = vmatmul.mubr.msk.f32.gmra.mxu0 %vm335_vm2, %v325_v47  ;;  %1186 = vmatprep.subr.mxu0 %v585_v5 }
 0x1b0   :  { %v326_v52 = vmax.f32 %v304_v50, 0.0  ;;  %v319_v54 = vadd.f32 %v1133_v51, %v946_v34  ;;  %1187 = vmatpush3.msra.mxu0 %v585_v5 }
 0x1b1   :  { %v313_v55 = vpop.f32.mrf.mxu1  ;;  %1188 = vmatprep.subr.mxu0 %v584_v6 }
 0x1b2   :  { %v314_v56 = vadd.f32 %v946_v34, %v313_v55  ;;  %1148 = vmatprep.mubr.msk.f32.mxu0 %vm335_vm2, %v326_v52  ;;  %v329_v58 = vmax.f32 %v319_v54, 0.0  ;;  %1189 = vmatpush3.msra.mxu0 %v584_v6 }
 0x1b3   :  { %1149 = vmatmul.mubr.msk.f32.gmra.mxu0 %vm335_vm2, %v327_v53 }
 0x1b4   :  { %v328_v57 = vmax.f32 %v314_v56, 0.0 }
 0x1b6   :  { %1151 = vmatprep.mubr.msk.f32.mxu0 %vm335_vm2, %v328_v57 }
 0x1b7   :  { %1152 = vmatmul.mubr.msk.f32.gmra.mxu0 %vm335_vm2, %v329_v58 }
 0x26b   :  { %v1144_v61 = vpop.f32.mrf.mxu0 }
 0x26d   :  { %v426_v62 = vpop.f32.mrf.mxu0 }
 0x26f   :  { %v1147_v63 = vpop.f32.mrf.mxu0 }
 0x271   :  { %v436_v0 = vpop.f32.mrf.mxu0 }
 0x273   :  { %v1150_v1 = vpop.f32.mrf.mxu0 }
 0x275   :  { %v446_v2 = vpop.f32.mrf.mxu0 }
 0x277   :  { %v1153_v3 = vpop.f32.mrf.mxu0 }
 0x278   :  { %1154 = vmatprep.subr.mxu1 %v1153_v3 }
 0x279   :  { %v456_v4 = vpop.f32.mrf.mxu0  ;;  %1155 = vmatpush3.msra.mxu1 %v1153_v3 }
 0x27a   :  { %1156 = vmatprep.subr.mxu1 %v456_v4 }
 0x27b   :  { %1157 = vmatpush3.msra.mxu1 %v456_v4 }
 0x27c   :  { %1158 = vmatprep.subr.mxu1 %v1150_v1 }
 0x27d   :  { %1159 = vmatpush3.msra.mxu1 %v1150_v1 }
 0x27e   :  { %1160 = vmatprep.subr.mxu1 %v446_v2 }
 0x27f   :  { %1161 = vmatpush3.msra.mxu1 %v446_v2 }
 0x280   :  { %1162 = vmatprep.subr.mxu1 %v1147_v63 }
 0x281   :  { %1163 = vmatpush3.msra.mxu1 %v1147_v63 }
 0x282   :  { %1164 = vmatprep.subr.mxu1 %v436_v0 }
 0x283   :  { %1165 = vmatpush3.msra.mxu1 %v436_v0 }
 0x284   :  { %1166 = vmatprep.subr.mxu1 %v1144_v61 }
 0x285   :  { %1167 = vmatpush3.msra.mxu1 %v1144_v61 }
 0x286   :  { %1168 = vmatprep.subr.mxu1 %v426_v62 }
 0x287   :  { %1169 = vmatpush3.msra.mxu1 %v426_v62 }
 0x288   :  { %1171 = vmatmul.mubr.msk.f32.vlgmr.msra.gmra.mxu1 %vm192_vm1, %v1377_v23 }
 0x289   :  { %1173 = vmatprep.mubr.msk.f32.mxu1 %vm192_vm1, %v1379_v24 }
 0x28c   :  { %1174 = vmatmul.mubr.msk.f32.gmra.mxu1 %vm192_vm1, %v1386_v26 }
 0x28d   :  { %1176 = vmatprep.mubr.msk.f32.mxu1 %vm192_vm1, %v1390_v27 }
 0x290   :  { %1177 = vmatmul.mubr.msk.f32.gmra.mxu1 %vm192_vm1, %v1397_v29 }
 0x291   :  { %1179 = vmatprep.mubr.msk.f32.mxu1 %vm192_vm1, %v1401_v30 }
 0x294   :  { %1180 = vmatmul.mubr.msk.f32.gmra.mxu1 %vm192_vm1, %v1405_v31 }
 0x295   :  { %1221 = vmatprep.mubr.msk.f32.mxu1 %vm192_vm1, %v1379_v24 }
 0x348   :  { %v1172_v8 = vpop.f32.mrf.mxu1 }
 0x349   :  { %v543_v9 = vadd.f32 %v1172_v8, %v963_v7 }
 0x34a   :  { %v537_v10 = vpop.f32.mrf.mxu1 }
 0x34b   :  { %v538_v12 = vadd.f32 %v963_v7, %v537_v10  ;;  %v577_v15 = vmax.f32 %v543_v9, 0.0 }
 0x34c   :  { %v1175_v13 = vpop.f32.mrf.mxu1 }
 0x34d   :  { %v576_v14 = vmax.f32 %v538_v12, 0.0  ;;  %v553_v16 = vadd.f32 %v1175_v13, %v963_v7 }
 0x34e   :  { %v547_v17 = vpop.f32.mrf.mxu1 }
 0x34f   :  { %v548_v18 = vadd.f32 %v963_v7, %v547_v17  ;;  %1190 = vmatprep.mubr.msk.f32.mxu0 %vm335_vm2, %v576_v14  ;;  %v579_v21 = vmax.f32 %v553_v16, 0.0 }
 0x350   :  { %v1178_v19 = vpop.f32.mrf.mxu1  ;;  %1191 = vmatmul.mubr.msk.f32.vlgmr.msra.gmra.mxu0 %vm335_vm2, %v577_v15 }
 0x351   :  { %v578_v20 = vmax.f32 %v548_v18, 0.0  ;;  %v563_v22 = vadd.f32 %v1178_v19, %v963_v7 }
 0x352   :  { %v557_v24 = vpop.f32.mrf.mxu1 }
 0x353   :  { %v558_v25 = vadd.f32 %v963_v7, %v557_v24  ;;  %1193 = vmatprep.mubr.msk.f32.mxu0 %vm335_vm2, %v578_v20  ;;  %v581_v33 = vmax.f32 %v563_v22, 0.0 }
 0x354   :  { %v1181_v28 = vpop.f32.mrf.mxu1  ;;  %1194 = vmatmul.mubr.msk.f32.gmra.mxu0 %vm335_vm2, %v579_v21 }
 0x355   :  { %v580_v32 = vmax.f32 %v558_v25, 0.0  ;;  %v573_v34 = vadd.f32 %v1181_v28, %v963_v7 }
 0x356   :  { %v567_v35 = vpop.f32.mrf.mxu1 }
 0x357   :  { %v568_v36 = vadd.f32 %v963_v7, %v567_v35  ;;  %1196 = vmatprep.mubr.msk.f32.mxu0 %vm335_vm2, %v580_v32  ;;  %v583_v38 = vmax.f32 %v573_v34, 0.0 }
 0x358   :  { %1197 = vmatmul.mubr.msk.f32.gmra.mxu0 %vm335_vm2, %v581_v33 }
 0x359   :  { %v582_v37 = vmax.f32 %v568_v36, 0.0 }
 0x35b   :  { %1199 = vmatprep.mubr.msk.f32.mxu0 %vm335_vm2, %v582_v37 }
 0x35c   :  { %1200 = vmatmul.mubr.msk.f32.gmra.mxu0 %vm335_vm2, %v583_v38 }
 0x35d   :  { %1218 = vmatprep.mubr.msk.f32.mxu0 %vm192_vm1, %v1364_v11  ;;  %v980_v11 = vld [vmem:[%s1573_s7] ss:$0 sm:$0xff] }
 0x410   :  { %v1192_v39 = vpop.f32.mrf.mxu0 }
 0x412   :  { %v679_v40 = vpop.f32.mrf.mxu0 }
 0x414   :  { %v1195_v41 = vpop.f32.mrf.mxu0 }
 0x416   :  { %v689_v42 = vpop.f32.mrf.mxu0 }
 0x418   :  { %v1198_v43 = vpop.f32.mrf.mxu0 }
 0x41a   :  { %v699_v44 = vpop.f32.mrf.mxu0 }
 0x41c   :  { %v1201_v45 = vpop.f32.mrf.mxu0 }
 0x41d   :  { %1202 = vmatprep.subr.mxu0 %v1201_v45  ;;  %1230 = vmatprep.subr.mxu1 %v1201_v45 }
 0x41e   :  { %v709_v46 = vpop.f32.mrf.mxu0  ;;  %1203 = vmatpush3.msra.mxu0 %v1201_v45  ;;  %1238 = vmatpush3.msra.mxu1 %v1201_v45 }
 0x41f   :  { %1204 = vmatprep.subr.mxu0 %v709_v46  ;;  %1231 = vmatprep.subr.mxu1 %v709_v46 }
 0x420   :  { %1205 = vmatpush3.msra.mxu0 %v709_v46  ;;  %1239 = vmatpush3.msra.mxu1 %v709_v46 }
 0x421   :  { %1206 = vmatprep.subr.mxu0 %v1198_v43  ;;  %1232 = vmatprep.subr.mxu1 %v1198_v43 }
 0x422   :  { %1207 = vmatpush3.msra.mxu0 %v1198_v43  ;;  %1240 = vmatpush3.msra.mxu1 %v1198_v43 }
 0x423   :  { %1208 = vmatprep.subr.mxu0 %v699_v44  ;;  %1233 = vmatprep.subr.mxu1 %v699_v44 }
 0x424   :  { %1209 = vmatpush3.msra.mxu0 %v699_v44  ;;  %1241 = vmatpush3.msra.mxu1 %v699_v44 }
 0x425   :  { %1210 = vmatprep.subr.mxu0 %v1195_v41  ;;  %1234 = vmatprep.subr.mxu1 %v1195_v41 }
 0x426   :  { %1211 = vmatpush3.msra.mxu0 %v1195_v41  ;;  %1242 = vmatpush3.msra.mxu1 %v1195_v41 }
 0x427   :  { %1212 = vmatprep.subr.mxu0 %v689_v42  ;;  %1235 = vmatprep.subr.mxu1 %v689_v42 }
 0x428   :  { %1213 = vmatpush3.msra.mxu0 %v689_v42  ;;  %1243 = vmatpush3.msra.mxu1 %v689_v42 }
 0x429   :  { %1214 = vmatprep.subr.mxu0 %v1192_v39  ;;  %1236 = vmatprep.subr.mxu1 %v1192_v39 }
 0x42a   :  { %1215 = vmatpush3.msra.mxu0 %v1192_v39  ;;  %1244 = vmatpush3.msra.mxu1 %v1192_v39 }
 0x42b   :  { %1216 = vmatprep.subr.mxu0 %v679_v40  ;;  %1237 = vmatprep.subr.mxu1 %v679_v40 }
 0x42c   :  { %1217 = vmatpush3.msra.mxu0 %v679_v40  ;;  %1245 = vmatpush3.msra.mxu1 %v679_v40 }
 0x42d   :  { %1219 = vmatmul.mubr.msk.f32.vlgmr.msra.gmra.mxu0 %vm192_vm1, %v1377_v23  ;;  %1222 = vmatmul.mubr.msk.f32.vlgmr.msra.gmra.mxu1 %vm192_vm1, %v1386_v26 }
 0x42e   :  { %1224 = vmatprep.mubr.msk.f32.mxu1 %vm192_vm1, %v1390_v27 }
 0x431   :  { %1225 = vmatmul.mubr.msk.f32.gmra.mxu1 %vm192_vm1, %v1397_v29 }
 0x432   :  { %1227 = vmatprep.mubr.msk.f32.mxu1 %vm192_vm1, %v1401_v30 }
 0x435   :  { %1228 = vmatmul.mubr.msk.f32.gmra.mxu1 %vm192_vm1, %v1405_v31 }
 0x4ed   :  { %v1220_v23 = vpop.f32.mrf.mxu0  ;;  %v1223_v47 = vpop.f32.mrf.mxu1 }
 0x4ee   :  { %v796_v26 = vadd.f32 %v1220_v23, %v980_v11  ;;  %v806_v48 = vadd.f32 %v1223_v47, %v980_v11 }
 0x4ef   :  { %v790_v49 = vpop.f32.mrf.mxu0  ;;  %v800_v27 = vpop.f32.mrf.mxu1 }
 0x4f0   :  { %v791_v50 = vadd.f32 %v980_v11, %v790_v49  ;;  %v839_v29 = vsel %vm829_vm3, %v806_v48, -inf  ;;  %v801_v51 = vadd.f32 %v980_v11, %v800_v27  ;;  %v833_v30 = vsel %vm829_vm3, %v796_v26, -inf }
 0x4f1   :  { %840 = vmax.xlane.f32.xlu1 %v839_v29  ;;  %834 = vmax.xlane.f32.xlu0 %v833_v30  ;;  %v1226_v31 = vpop.f32.mrf.mxu1 }
 0x4f2   :  { %v816_v52 = vadd.f32 %v1226_v31, %v980_v11  ;;  %v836_v53 = vsel %vm829_vm3, %v801_v51, -inf  ;;  %v830_v56 = vsel %vm829_vm3, %v791_v50, -inf }
 0x4f3   :  { %v810_v54 = vpop.f32.mrf.mxu1 }
 0x4f4   :  { %v811_v55 = vadd.f32 %v980_v11, %v810_v54  ;;  %v845_v59 = vsel %vm829_vm3, %v816_v52, -inf }
 0x4f5   :  { %837 = vmax.xlane.f32.xlu1 %v836_v53  ;;  %831 = vmax.xlane.f32.xlu0 %v830_v56  ;;  %v1229_v57 = vpop.f32.mrf.mxu1 }
 0x4f6   :  { %v826_v58 = vadd.f32 %v1229_v57, %v980_v11  ;;  %v842_v60 = vsel %vm829_vm3, %v811_v55, -inf }
 0x4f7   :  { %v820_v61 = vpop.f32.mrf.mxu1 }
 0x4f8   :  { %v821_v62 = vadd.f32 %v980_v11, %v820_v61  ;;  %v851_v63 = vsel %vm829_vm3, %v826_v58, -inf }
 0x4f9   :  { %846 = vmax.xlane.f32.xlu1 %v845_v59  ;;  %843 = vmax.xlane.f32.xlu0 %v842_v60 }
 0x4fa   :  { %v848_v0 = vsel %vm829_vm3, %v821_v62, -inf }
 0x4fd   :  { %852 = vmax.xlane.f32.xlu1 %v851_v63  ;;  %849 = vmax.xlane.f32.xlu0 %v848_v0 }
 0x57a   :  { %v841_v1 = vpop.xlane.xlu1 %840  ;;  %v835_v2 = vpop.xlane.xlu0 %834 }
 0x57b   :  { %v1494_v3 = vsub.f32 %v806_v48, %v841_v1  ;;  %v1496_v4 = vsub.f32 %v796_v26, %v835_v2 }
 0x57d   :  { %v864_v5 = vmul.f32 1.442695, %v1496_v4  ;;  %v868_v6 = vmul.f32 1.442695, %v1494_v3 }
 0x57e   :  { %v838_v7 = vpop.xlane.xlu1 %837  ;;  %v832_v8 = vpop.xlane.xlu0 %831 }
 0x57f   :  { %v1500_v9 = vsub.f32 %v801_v51, %v838_v7  ;;  %v1502_v10 = vsub.f32 %v791_v50, %v832_v8  ;;  %1246 = vpow2.f32 %v864_v5 }
 0x580   :  { %1248 = vpow2.f32 %v868_v6 }
 0x581   :  { %v862_v12 = vmul.f32 1.442695, %v1502_v10  ;;  %v866_v13 = vmul.f32 1.442695, %v1500_v9 }
 0x582   :  { %v847_v14 = vpop.xlane.xlu1 %846  ;;  %v844_v15 = vpop.xlane.xlu0 %843 }
 0x583   :  { %v1506_v16 = vsub.f32 %v816_v52, %v847_v14  ;;  %v1508_v17 = vsub.f32 %v811_v55, %v844_v15  ;;  %1250 = vpow2.f32 %v862_v12 }
 0x584   :  { %1252 = vpow2.f32 %v866_v13 }
 0x585   :  { %v872_v18 = vmul.f32 1.442695, %v1506_v16  ;;  %v870_v19 = vmul.f32 1.442695, %v1508_v17 }
 0x586   :  { %v853_v20 = vpop.xlane.xlu1 %852  ;;  %v850_v21 = vpop.xlane.xlu0 %849 }
 0x587   :  { %1254 = vpow2.f32 %v872_v18  ;;  %v1512_v22 = vsub.f32 %v826_v58, %v853_v20  ;;  %v1514_v24 = vsub.f32 %v821_v62, %v850_v21 }
 0x588   :  { %1256 = vpow2.f32 %v870_v19 }
 0x589   :  { %v876_v25 = vmul.f32 1.442695, %v1512_v22  ;;  %v874_v28 = vmul.f32 1.442695, %v1514_v24 }
 0x58b   :  { %1258 = vpow2.f32 %v876_v25 }
 0x58c   :  { %v1247_v32 = vpop.eup %1246  ;;  %1260 = vpow2.f32 %v874_v28 }
 0x58d   :  { %v881_v33 = vsel %vm829_vm3, %v1247_v32, 0.0  ;;  %v1249_v34 = vpop.eup %1248 }
 0x58e   :  { %882 = vadd.xlane.f32.xlu1 %v881_v33  ;;  %v887_v36 = vsel %vm829_vm3, %v1249_v34, 0.0 }
 0x590   :  { %v1251_v35 = vpop.eup %1250 }
 0x591   :  { %v878_v37 = vsel %vm829_vm3, %v1251_v35, 0.0  ;;  %v1253_v38 = vpop.eup %1252 }
 0x592   :  { %888 = vadd.xlane.f32.xlu1 %v887_v36  ;;  %879 = vadd.xlane.f32.xlu0 %v878_v37  ;;  %v884_v41 = vsel %vm829_vm3, %v1253_v38, 0.0 }
 0x594   :  { %v1255_v39 = vpop.eup %1254 }
 0x595   :  { %v893_v40 = vsel %vm829_vm3, %v1255_v39, 0.0  ;;  %v1257_v42 = vpop.eup %1256 }
 0x596   :  { %894 = vadd.xlane.f32.xlu1 %v893_v40  ;;  %885 = vadd.xlane.f32.xlu0 %v884_v41  ;;  %v890_v45 = vsel %vm829_vm3, %v1257_v42, 0.0 }
 0x598   :  { %v1259_v43 = vpop.eup %1258 }
 0x599   :  { %v899_v44 = vsel %vm829_vm3, %v1259_v43, 0.0  ;;  %v1261_v46 = vpop.eup %1260 }
 0x59a   :  { %900 = vadd.xlane.f32.xlu1 %v899_v44  ;;  %891 = vadd.xlane.f32.xlu0 %v890_v45  ;;  %v896_v11 = vsel %vm829_vm3, %v1261_v46, 0.0 }
 0x59e   :  { %897 = vadd.xlane.f32.xlu0 %v896_v11 }
 0x617   :  { %v883_v23 = vpop.xlane.xlu1 %882 }
 0x618   :  { %1262 = vlog2.f32 %v883_v23 }
 0x61b   :  { %v889_v47 = vpop.xlane.xlu1 %888  ;;  %v880_v26 = vpop.xlane.xlu0 %879 }
 0x61c   :  { %1264 = vlog2.f32 %v889_v47 }
 0x61d   :  { %1266 = vlog2.f32 %v880_v26 }
 0x61f   :  { %v895_v48 = vpop.xlane.xlu1 %894  ;;  %v886_v49 = vpop.xlane.xlu0 %885 }
 0x620   :  { %1268 = vlog2.f32 %v895_v48 }
 0x621   :  { %1270 = vlog2.f32 %v886_v49 }
 0x623   :  { %v901_v27 = vpop.xlane.xlu1 %900  ;;  %v892_v50 = vpop.xlane.xlu0 %891 }
 0x624   :  { %1272 = vlog2.f32 %v901_v27 }
 0x625   :  { %v1263_v29 = vpop.eup %1262  ;;  %1274 = vlog2.f32 %v892_v50 }
 0x626   :  { %v905_v51 = vmul.f32 0.6931472, %v1263_v29 }
 0x627   :  { %v898_v30 = vpop.xlane.xlu0 %897 }
 0x628   :  { %v919_v31 = vsub.f32 %v1496_v4, %v905_v51  ;;  %1276 = vlog2.f32 %v898_v30 }
 0x629   :  { %v1265_v52 = vpop.eup %1264 }
 0x62a   :  { %v1267_v53 = vpop.eup %1266  ;;  %927 = vst.msk [vmem:[%s1574_s8 + $0x8] sm:$0xff] %vm829_vm3, %v919_v31  ;;  %v909_v54 = vmul.f32 0.6931472, %v1265_v52 }
 0x62b   :  { %v903_v55 = vmul.f32 0.6931472, %v1267_v53 }
 0x62c   :  { %v921_v56 = vsub.f32 %v1494_v3, %v909_v54 }
 0x62d   :  { %v1269_v57 = vpop.eup %1268  ;;  %v918_v58 = vsub.f32 %v1502_v10, %v903_v55 }
 0x62e   :  { %v1271_v59 = vpop.eup %1270  ;;  %929 = vst.msk [vmem:[%s1574_s8 + $0x18] sm:$0xff] %vm829_vm3, %v921_v56  ;;  %v913_v60 = vmul.f32 0.6931472, %v1269_v57 }
 0x62f   :  { %926 = vst.msk [vmem:[%s1574_s8] sm:$0xff] %vm829_vm3, %v918_v58  ;;  %v907_v61 = vmul.f32 0.6931472, %v1271_v59 }
 0x630   :  { %v923_v62 = vsub.f32 %v1506_v16, %v913_v60 }
 0x631   :  { %v1273_v63 = vpop.eup %1272  ;;  %v920_v0 = vsub.f32 %v1500_v9, %v907_v61 }
 0x632   :  { %v1275_v1 = vpop.eup %1274  ;;  %931 = vst.msk [vmem:[%s1574_s8 + $0x28] sm:$0xff] %vm829_vm3, %v923_v62  ;;  %v917_v2 = vmul.f32 0.6931472, %v1273_v63 }
 0x633   :  { %928 = vst.msk [vmem:[%s1574_s8 + $0x10] sm:$0xff] %vm829_vm3, %v920_v0  ;;  %v911_v3 = vmul.f32 0.6931472, %v1275_v1 }
 0x634   :  { %v925_v4 = vsub.f32 %v1512_v22, %v917_v2 }
 0x635   :  { %v1277_v5 = vpop.eup %1276  ;;  %v922_v6 = vsub.f32 %v1508_v17, %v911_v3 }
 0x636   :  { %933 = vst.msk [vmem:[%s1574_s8 + $0x38] sm:$0xff] %vm829_vm3, %v925_v4  ;;  %v915_v7 = vmul.f32 0.6931472, %v1277_v5 }
 0x637   :  { %930 = vst.msk [vmem:[%s1574_s8 + $0x20] sm:$0xff] %vm829_vm3, %v922_v6 }
 0x638   :  { %v924_v8 = vsub.f32 %v1514_v24, %v915_v7 }
 0x63a   :  { %932 = vst.msk [vmem:[%s1574_s8 + $0x30] sm:$0xff] %vm829_vm3, %v924_v8 }

</bundles_post_ra>
